<compile_context>
chip_gen: v5e
topology: v5e:2x2
jax: 0.10.0
libtpu: 0.0.40
codegen_flags: <defaults>
</compile_context>

<pallas_src>
import jax
import jax.numpy as jnp
from jax.experimental import pallas as pl
from jax.experimental.pallas import tpu as pltpu


def _round_up(x, m):
    return ((x + m - 1) // m) * m


def _vmem_capacity_bytes():
    """Per-core VMEM capacity; conservative fallback safe on all generations."""
    try:
        info = pltpu.get_tpu_info()
        cap = getattr(info, "vmem_capacity_bytes", None)
        if cap:
            return int(cap)
    except Exception:
        pass
    return 64 * 2**20  # safe on v7x; merely conservative on v5e/v6e


def _gate_kernel(x_ref, w1_ref, b1_ref, w2_ref, b2_ref, out_ref):
    # x:  [TM, H]     w1: [H, H]      b1: [1, H]
    # w2: [H, E_pad]  b2: [1, E_pad]  out: [TM, E_pad]   (E_pad = 128-multiple)
    x = x_ref[...]
    if x.dtype != w1_ref.dtype:
        # Cast per-tile in-register (keeps x's HBM traffic at its own dtype).
        x = x.astype(w1_ref.dtype)
    # fc1 on the MXU, f32 accumulation.
    h = jnp.dot(x, w1_ref[...], preferred_element_type=jnp.float32)
    h = h + b1_ref[...].astype(jnp.float32)     # broadcast over rows (VPU)
    h = jnp.maximum(h, 0.0)                     # ReLU in f32
    # fc2: cast the activation to the weight dtype so the MXU runs at its
    # native precision; accumulate in f32.
    o = jnp.dot(h.astype(w2_ref.dtype), w2_ref[...],
                preferred_element_type=jnp.float32)
    o = o + b2_ref[...].astype(jnp.float32)
    out_ref[...] = o.astype(out_ref.dtype)


def depth_2_gate(x, w1, b1, w2, b2, *, block_rows=None, matmul_dtype=None):
    """out = relu(x @ w1 + b1) @ w2 + b2, broadcast over leading dims of x.

    x:  [..., H]       w1: [H, H]  (pre-transposed: [in, out])
    b1: [H] or [1, H]  w2: [H, E]  b2: [E] or [1, E]
    matmul_dtype: optional dtype (e.g. jnp.bfloat16) for the MXU matmuls;
        weights are cast once in the wrapper, x is cast per-tile in-kernel,
        accumulation stays f32.  Recommended on v5e for ~2x MXU throughput.
    """
    hidden = x.shape[-1]
    num_experts = w2.shape[-1]
    lead_shape = x.shape[:-1]
    out_dtype = x.dtype

    # Biases as 2-D (1, N) so the kernel broadcast is a plain vreg op.
    if b1.ndim == 1:
        b1 = b1.reshape(1, hidden)
    if b2.ndim == 1:
        b2 = b2.reshape(1, num_experts)

    if matmul_dtype is not None:
        w1 = w1.astype(matmul_dtype)
        w2 = w2.astype(matmul_dtype)

    x2d = x.reshape(-1, hidden)
    rows = x2d.shape[0]

    # --- Lane-dense output: pad E up to a multiple of 128 (tiny, one-time) ---
    e_pad = _round_up(max(num_experts, 128), 128)
    if e_pad != num_experts:
        w2p = jnp.pad(w2, ((0, 0), (0, e_pad - num_experts)))
        b2p = jnp.pad(b2, ((0, 0), (0, e_pad - num_experts)))
    else:
        w2p, b2p = w2, b2

    x_isz = jnp.dtype(x2d.dtype).itemsize
    w1_isz = jnp.dtype(w1.dtype).itemsize
    w2_isz = jnp.dtype(w2p.dtype).itemsize
    b1_isz = jnp.dtype(b1.dtype).itemsize
    b2_isz = jnp.dtype(b2p.dtype).itemsize
    out_isz = jnp.dtype(out_dtype).itemsize

    # --- Row tile selection -------------------------------------------------
    sub = 8 if x_isz == 4 else (16 if x_isz == 2 else 32)
    if block_rows is None:
        # Small-H / weight-tiny regime is x-streaming (HBM) bound: use bigger
        # row tiles to amortize per-grid-step overhead (VMEM check below).
        block_rows = 2048 if hidden <= 512 else 512
    tm_cap = int(block_rows)
    # Ensure >=2 grid steps when rows allow, so the "parallel" row axis shards
    # across both TensorCores on v7x (neutral on single-TC v5e/v6e).
    if rows > 2 * sub:
        tm_cap = min(tm_cap, _round_up(pl.cdiv(rows, 2), sub))
    tm = _round_up(max(sub, min(tm_cap, rows)), sub)

    # --- VMEM budget: resident (single-buffered) weights + streamed tiles
    #     + per-step intermediates (f32 h, its cast copy, f32 o) -------------
    weight_bytes = (w1.size * w1_isz + b1.size * b1_isz
                    + w2p.size * w2_isz + b2p.size * b2_isz)

    def vmem_needed(tm_):
        stream = 2 * tm_ * hidden * x_isz + 2 * tm_ * e_pad * out_isz
        h_f32 = tm_ * hidden * 4
        h_cast = tm_ * hidden * w2_isz if w2p.dtype != jnp.float32 else 0
        o_f32 = tm_ * e_pad * 4
        return weight_bytes + stream + h_f32 + h_cast + o_f32

    cap = int(0.85 * _vmem_capacity_bytes())
    while tm > sub and vmem_needed(tm) > cap:
        tm = _round_up(max(sub, tm // 2), sub)
    vmem_limit = int(min(cap, max(16 * 2**20, int(1.4 * vmem_needed(tm)))))

    grid = (pl.cdiv(rows, tm),)  # ragged last block: Pallas masks OOB writes

    # --- Advisory cost estimate for the XLA scheduler -----------------------
    flops = 2 * rows * hidden * hidden + 2 * rows * hidden * e_pad
    bytes_accessed = (rows * hidden * x_isz + weight_bytes
                      + rows * e_pad * out_isz)
    cost = pl.CostEstimate(flops=int(flops), transcendentals=0,
                           bytes_accessed=int(bytes_accessed))

    out = pl.pallas_call(
        _gate_kernel,
        out_shape=jax.ShapeDtypeStruct((rows, e_pad), out_dtype),
        grid_spec=pltpu.PrefetchScalarGridSpec(
            num_scalar_prefetch=0,
            grid=grid,
            in_specs=[
                # x streams in row tiles (double-buffered by default).
                pl.BlockSpec((tm, hidden), lambda i: (i, 0)),
                # Weights / biases: resident, single-buffered.
                pl.BlockSpec((hidden, hidden), lambda i: (0, 0),
                             pipeline_mode=pl.Buffered(1)),
                pl.BlockSpec((1, hidden), lambda i: (0, 0),
                             pipeline_mode=pl.Buffered(1)),
                pl.BlockSpec((hidden, e_pad), lambda i: (0, 0),
                             pipeline_mode=pl.Buffered(1)),
                pl.BlockSpec((1, e_pad), lambda i: (0, 0),
                             pipeline_mode=pl.Buffered(1)),
            ],
            out_specs=pl.BlockSpec((tm, e_pad), lambda i: (i, 0)),
        ),
        compiler_params=pltpu.CompilerParams(
            dimension_semantics=("parallel",),
            vmem_limit_bytes=vmem_limit),
        cost_estimate=cost,
    )(x2d, w1, b1, w2p, b2p)

    out = out[:, :num_experts]
    return out.reshape(*lead_shape, num_experts)


def init_params(key, hidden_size, num_experts, init_lambda=1.0,
                dtype=jnp.float32):
    """Mirror Depth_2_Gate.init_weight: normal(std=0.01) weights, zero bias
    for fc1, constant init_lambda bias for fc2.  Weights are stored
    pre-transposed to [in, out]; biases are returned 2-D (1, N)."""
    k1, k2 = jax.random.split(key)
    w1 = (0.01 * jax.random.normal(k1, (hidden_size, hidden_size))).astype(dtype)
    b1 = jnp.zeros((1, hidden_size), dtype)
    w2 = (0.01 * jax.random.normal(k2, (hidden_size, num_experts))).astype(dtype)
    b2 = jnp.full((1, num_experts), init_lambda, dtype)
    return w1, b1, w2, b2


if __name__ == "__main__":
    batch, seq, hidden, num_experts = 2, 8, 32, 4
    init_lambda = 0.5

    key = jax.random.PRNGKey(0)
    kx, kp, kx2 = jax.random.split(key, 3)
    x = jax.random.normal(kx, (batch, seq, hidden), dtype=jnp.float32)
    w1, b1, w2, b2 = init_params(kp, hidden, num_experts, init_lambda)

    # Reference in plain JAX (same math as the PyTorch module).
    def ref_fn(xv):
        return jnp.maximum(xv @ w1 + b1[0], 0.0) @ w2 + b2[0]

    ref = ref_fn(x)

    # 1) f32 path, single tile.
    out = jax.block_until_ready(depth_2_gate(x, w1, b1, w2, b2))
    assert out.shape == (batch, seq, num_experts)
    assert jnp.allclose(out, ref, atol=1e-5, rtol=1e-5)

    # 2) f32 path, forced multi-tile grid with a RAGGED final block
    #    (rows = 3*5 = 15, tm = 8 -> last block masked).
    x_rag = jax.random.normal(kx2, (3, 5, hidden), dtype=jnp.float32)
    ref_rag = ref_fn(x_rag)
    out_rag = jax.block_until_ready(
        depth_2_gate(x_rag, w1, b1, w2, b2, block_rows=8))
    assert out_rag.shape == (3, 5, num_experts)
    assert jnp.allclose(out_rag, ref_rag, atol=1e-5, rtol=1e-5)

    # 3) bf16 inputs (bf16 MXU matmuls, f32 accumulation) — looser tolerance.
    xb = x.astype(jnp.bfloat16)
    w1b, b1b, w2b, b2b = (w1.astype(jnp.bfloat16), b1.astype(jnp.bfloat16),
                          w2.astype(jnp.bfloat16), b2.astype(jnp.bfloat16))
    out_bf = jax.block_until_ready(depth_2_gate(xb, w1b, b1b, w2b, b2b))
    assert out_bf.shape == (batch, seq, num_experts)
    assert jnp.allclose(out_bf.astype(jnp.float32), ref, atol=5e-2, rtol=5e-2)

    # 4) f32 inputs with bf16 MXU matmuls (v5e-recommended mode).
    out_mx = jax.block_until_ready(
        depth_2_gate(x, w1, b1, w2, b2, matmul_dtype=jnp.bfloat16))
    assert jnp.allclose(out_mx, ref, atol=5e-2, rtol=5e-2)

    print("KERNEL_OK")
</pallas_src>

<mosaic_0001>
module attributes {stable_mosaic.version = 11 : i64} {
  func.func @_gate_kernel(%arg0: i32, %arg1: memref<16x32xf32, #tpu.memory_space<vmem>>, %arg2: memref<32x32xf32, #tpu.memory_space<vmem>>, %arg3: memref<1x32xf32, #tpu.memory_space<vmem>>, %arg4: memref<32x128xf32, #tpu.memory_space<vmem>>, %arg5: memref<1x128xf32, #tpu.memory_space<vmem>>, %arg6: memref<16x128xf32, #tpu.memory_space<vmem>>) attributes {dimension_semantics = [#tpu.dimension_semantics<parallel>], iteration_bounds = array<i64: 1>, scalar_prefetch = 0 : i64, scratch_operands = 0 : i64, tpu.core_type = #tpu.core_type<tc>, window_params = [{transform_indices = @transform_0, window_bounds = array<i64: 16, 32>}, {pipeline_mode = #tpu.pipeline_mode<synchronous>, transform_indices = @transform_1, window_bounds = array<i64: 32, 32>}, {pipeline_mode = #tpu.pipeline_mode<synchronous>, transform_indices = @transform_2, window_bounds = array<i64: 1, 32>}, {pipeline_mode = #tpu.pipeline_mode<synchronous>, transform_indices = @transform_3, window_bounds = array<i64: 32, 128>}, {pipeline_mode = #tpu.pipeline_mode<synchronous>, transform_indices = @transform_4, window_bounds = array<i64: 1, 128>}, {transform_indices = @transform_5, window_bounds = array<i64: 16, 128>}]} {
    %c0 = arith.constant 0 : index
    %c0_0 = arith.constant 0 : index
    %0 = vector.load %arg1[%c0, %c0_0] : memref<16x32xf32, #tpu.memory_space<vmem>>, vector<16x32xf32>
    %c0_1 = arith.constant 0 : index
    %c0_2 = arith.constant 0 : index
    %1 = vector.load %arg2[%c0_1, %c0_2] : memref<32x32xf32, #tpu.memory_space<vmem>>, vector<32x32xf32>
    %cst = arith.constant dense<0.000000e+00> : vector<16x32xf32>
    %2 = tpu.matmul %0, %1, %cst {dimension_numbers = #tpu.dot_dimension_numbers<[1], [0], [0], [1], [0, 0, 1, 1], [], []>} : vector<16x32xf32>, vector<32x32xf32>, vector<16x32xf32> -> vector<16x32xf32>
    %c0_3 = arith.constant 0 : index
    %c0_4 = arith.constant 0 : index
    %3 = vector.load %arg3[%c0_3, %c0_4] : memref<1x32xf32, #tpu.memory_space<vmem>>, vector<1x32xf32>
    %4 = vector.broadcast %3 : vector<1x32xf32> to vector<16x32xf32>
    %5 = arith.addf %2, %4 : vector<16x32xf32>
    %cst_5 = arith.constant 0.000000e+00 : f32
    %6 = vector.broadcast %cst_5 : f32 to vector<16x32xf32>
    %7 = arith.maximumf %5, %6 : vector<16x32xf32>
    %c0_6 = arith.constant 0 : index
    %c0_7 = arith.constant 0 : index
    %8 = vector.load %arg4[%c0_6, %c0_7] : memref<32x128xf32, #tpu.memory_space<vmem>>, vector<32x128xf32>
    %cst_8 = arith.constant dense<0.000000e+00> : vector<16x128xf32>
    %9 = tpu.matmul %7, %8, %cst_8 {dimension_numbers = #tpu.dot_dimension_numbers<[1], [0], [0], [1], [0, 0, 1, 1], [], []>} : vector<16x32xf32>, vector<32x128xf32>, vector<16x128xf32> -> vector<16x128xf32>
    %c0_9 = arith.constant 0 : index
    %c0_10 = arith.constant 0 : index
    %10 = vector.load %arg5[%c0_9, %c0_10] : memref<1x128xf32, #tpu.memory_space<vmem>>, vector<1x128xf32>
    %11 = vector.broadcast %10 : vector<1x128xf32> to vector<16x128xf32>
    %12 = arith.addf %9, %11 : vector<16x128xf32>
    %c0_11 = arith.constant 0 : index
    %c0_12 = arith.constant 0 : index
    %13 = vector.load %arg6[%c0_11, %c0_12] : memref<16x128xf32, #tpu.memory_space<vmem>>, vector<16x128xf32>
    tpu.vector_store %arg6[%c0_11, %c0_12], %12 {strides = array<i32>} : memref<16x128xf32, #tpu.memory_space<vmem>>, vector<16x128xf32>,
    return
  }
  func.func @transform_0(%arg0: i32) -> (i32, i32) {
    %c0_i32 = arith.constant 0 : i32
    %c0_i32_0 = arith.constant 0 : i32
    return %arg0, %c0_i32 : i32, i32
  }
  func.func @transform_1(%arg0: i32) -> (i32, i32) {
    %c0_i32 = arith.constant 0 : i32
    %c0_i32_0 = arith.constant 0 : i32
    %c0_i32_1 = arith.constant 0 : i32
    return %c0_i32, %c0_i32_0 : i32, i32
  }
  func.func @transform_2(%arg0: i32) -> (i32, i32) {
    %c0_i32 = arith.constant 0 : i32
    %c0_i32_0 = arith.constant 0 : i32
    %c0_i32_1 = arith.constant 0 : i32
    return %c0_i32, %c0_i32_0 : i32, i32
  }
  func.func @transform_3(%arg0: i32) -> (i32, i32) {
    %c0_i32 = arith.constant 0 : i32
    %c0_i32_0 = arith.constant 0 : i32
    %c0_i32_1 = arith.constant 0 : i32
    return %c0_i32, %c0_i32_0 : i32, i32
  }
  func.func @transform_4(%arg0: i32) -> (i32, i32) {
    %c0_i32 = arith.constant 0 : i32
    %c0_i32_0 = arith.constant 0 : i32
    %c0_i32_1 = arith.constant 0 : i32
    return %c0_i32, %c0_i32_0 : i32, i32
  }
  func.func @transform_5(%arg0: i32) -> (i32, i32) {
    %c0_i32 = arith.constant 0 : i32
    %c0_i32_0 = arith.constant 0 : i32
    return %arg0, %c0_i32 : i32, i32
  }
}

</mosaic_0001>

<bundles_post_ra>
// kernel: tpu_custom_call.1
= control target key start
LH: loop header
LB: loop body
LE: loop exit
PB: predicated region body
PF: predicated region fallthrough
CT: control target
= control target key end

     0   :  { %10 = vsyncpa [#allocation3], 0  ;;  %s361_s0 = inlined_call_operand.hbm [shape: f32[16,32], index: 0, kind: input, shape index: {}]   ;;  %s362_s1 = inlined_call_operand.hbm [shape: f32[32,32], index: 1, kind: input, shape index: {}]   ;;  %s363_s2 = inlined_call_operand.vmem [shape: f32[1,32], index: 2, kind: input, shape index: {}]   ;;  %s364_s3 = inlined_call_operand.hbm [shape: f32[32,128], index: 3, kind: input, shape index: {}]   ;;  %s365_s4 = inlined_call_operand.vmem [shape: f32[1,128], index: 4, kind: input, shape index: {}]   ;;  %s366_s5 = inlined_call_operand.hbm [shape: f32[16,128], index: 5, kind: output, shape index: {}]  }
   0x1   :  { %11 = vsyncpa [#allocation6], 0 }
   0x2   :  { %12 = vsyncpa [#allocation4], 0  ;;  %s30_s20 = sshll.u32 %s362_s1, 4  ;;  %s291_s21 = smov [#allocation5]   ;;  %s31_s20 = int_to_ptr.hbm [resolvable:$true] %s30_s20 }
   0x3   :  { %s32_s22 = sshll.u32 %s291_s21, 4  ;;  %s17_s25 = sshll.u32 %s361_s0, 4  ;;  %s33_s22 = int_to_ptr.vmem [resolvable:$true] %s32_s22  ;;  %s18_s25 = int_to_ptr.hbm [resolvable:$true] %s17_s25 }
   0x4   :  { %s292_s26 = smov 128   ;;  %s293_s27 = smov 8  }
   0x5   :  { %38 = dma.hbm_to_vmem [thread:$0]  %s31_s20, 512, %s33_s22, [#allocation6], %s292_s26, %s292_s26, %s293_s27  }
   0x6   :  { %s294_s28 = smov [#allocation2]   ;;  %s45_s1 = sshll.u32 %s364_s3, 4  ;;  %s46_s1 = int_to_ptr.hbm [resolvable:$true] %s45_s1 }
   0x7   :  { %s19_s29 = sshll.u32 %s294_s28, 4  ;;  %s295_s0 = smov [#allocation7]   ;;  %s20_s29 = int_to_ptr.vmem [resolvable:$true] %s19_s29 }
   0x8   :  { %25 = dma.hbm_to_vmem [thread:$0]  %s18_s25, 256, %s20_s29, [#allocation3], %s292_s26, %s292_s26, %s293_s27  }
   0x9   :  { %s47_s7 = sshll.u32 %s295_s0, 4  ;;  %s48_s7 = int_to_ptr.vmem [resolvable:$true] %s47_s7 }
   0xa   :  { %53 = dma.hbm_to_vmem [thread:$0]  %s46_s1, 512, %s48_s7, [#allocation6], %s292_s26, %s292_s26, %s293_s27  }
   0xb   :  { %285 = dma.done.wait [#allocation3], 256  }
   0xc   :  { %286 = vsyncadd [#allocation3], 4294967040 }
   0xd   :  { %287 = dma.done.wait [#allocation6], 1024  }
   0xe   :  { %288 = vsyncadd [#allocation6], 4294966272  ;;  %v73_v0 = vld [vmem:[#allocation5 + $0x18] sm:$0xff]  ;;  %v72_v1 = vld [vmem:[#allocation5 + $0x10] sm:$0xff]  ;;  %vm78_vm0 = vcmask 261120   ;;  %s296_s11 = smov [#allocation8]  }
   0xf   :  { %173 = vmatpush.msra.mxu2 %v73_v0  ;;  %97 = vmatpush.msra.mxu0 %v73_v0  ;;  %v71_v2 = vld [vmem:[#allocation5 + $0x8] sm:$0xff]  ;;  %v113_v3 = vld [vmem:[#allocation7 + $0x18] sm:$0xff]  ;;  %v70_v4 = vld [vmem:[#allocation5] sm:$0xff]  ;;  %s153_s12 = sshll.u32 %s296_s11, 4  ;;  %s155_s14 = sshll.u32 %s366_s5, 4  ;;  %s154_s12 = int_to_ptr.vmem [resolvable:$true] %s153_s12  ;;  %s156_s14 = int_to_ptr.hbm [resolvable:$true] %s155_s14 }
  0x10   :  { %177 = vmatpush.msra.mxu3 %v113_v3  ;;  %136 = vmatpush.msra.mxu1 %v113_v3  ;;  %v69_v5 = vld [vmem:[#allocation2 + $0x8] sm:$0xff]  ;;  %v68_v6 = vld [vmem:[#allocation2] sm:$0xff]  ;;  %v111_v8 = vld [vmem:[#allocation7 + $0x8] sm:$0xff] }
  0x11   :  { %174 = vmatpush.msra.mxu2 %v72_v1  ;;  %98 = vmatpush.msra.mxu0 %v72_v1  ;;  %v112_v7 = vld [vmem:[#allocation7 + $0x10] sm:$0xff]  ;;  %v110_v9 = vld [vmem:[#allocation7] sm:$0xff] }
  0x12   :  { %178 = vmatpush.msra.mxu3 %v112_v7  ;;  %137 = vmatpush.msra.mxu1 %v112_v7  ;;  %v187_v10 = vld [vmem:[%s363_s2] ss:$0 sm:$0xff] }
  0x13   :  { %175 = vmatpush.msra.mxu2 %v71_v2  ;;  %99 = vmatpush.msra.mxu0 %v71_v2  ;;  %v188_v17 = vld [vmem:[%s365_s4] ss:$0 sm:$0xff] }
  0x14   :  { %179 = vmatpush.msra.mxu3 %v111_v8  ;;  %138 = vmatpush.msra.mxu1 %v111_v8 }
  0x15   :  { %176 = vmatpush.msra.mxu2 %v70_v4  ;;  %100 = vmatpush.msra.mxu0 %v70_v4 }
  0x16   :  { %170 = vmatmul.msk.f32.vlgmr.msra.gmra.mxu2 %vm78_vm0, %v69_v5  ;;  %169 = vmatmul.msk.f32.vlgmr.msra.gmra.mxu0 %vm78_vm0, %v68_v6 }
  0x17   :  { %180 = vmatpush.msra.mxu3 %v110_v9  ;;  %139 = vmatpush.msra.mxu1 %v110_v9 }
  0x93   :  { %v102_v11 = vpop.f32.mrf.mxu0 }
  0x94   :  { %v103_v12 = vadd.f32 %v187_v10, %v102_v11 }
  0x96   :  { %v108_v13 = vmax.f32 %v103_v12, 0.0 }
  0x98   :  { %171 = vmatmul.msk.f32.vlgmr.msra.gmra.mxu1 %vm78_vm0, %v108_v13 }
  0x99   :  { %v105_v14 = vpop.f32.mrf.mxu2 }
  0x9a   :  { %v106_v15 = vadd.f32 %v187_v10, %v105_v14 }
  0x9c   :  { %v109_v16 = vmax.f32 %v106_v15, 0.0 }
  0x9e   :  { %172 = vmatmul.msk.f32.vlgmr.msra.gmra.mxu3 %vm78_vm0, %v109_v16 }
 0x115   :  { %v141_v18 = vpop.f32.mrf.mxu1 }
 0x116   :  { %v142_v19 = vadd.f32 %v188_v17, %v141_v18 }
 0x118   :  { %147 = vst [vmem:[#allocation8] sm:$0xff] %v142_v19 }
 0x121   :  { %v144_v20 = vpop.f32.mrf.mxu3 }
 0x122   :  { %v145_v21 = vadd.f32 %v188_v17, %v144_v20 }
 0x124   :  { %148 = vst [vmem:[#allocation8 + $0x8] sm:$0xff] %v145_v21 }
 0x125   :  { %161 = dma.vmem_to_hbm [thread:$0]  %s154_s12, 256, %s156_s14, [#allocation4], %s292_s26, %s292_s26, %s293_s27  }
 0x126   :  { %289 = dma.done.wait [#allocation4], 256  }
 0x127   :  { %290 = vsyncadd [#allocation4], 4294967040 }
 0x128   :  { %166 = vsyncpa [#allocation3], 1 }
 0x129   :  { %167 = vsyncpa [#allocation6], 1 }
 0x12a   :  { %168 = vsyncpa [#allocation4], 1 }

</bundles_post_ra>
